<compile_context>
chip_gen: v5e
topology: v5e:2x2
jax: 0.10.0
libtpu: 0.0.40
codegen_flags: <defaults>
</compile_context>

<pallas_src>
import jax
import jax.numpy as jnp
from jax.experimental import pallas as pl
from jax.experimental.pallas import tpu as pltpu


def _projector_kernel(x_ref, w_ref, b_ref, o_ref):
    # x_ref: (tm, H), w_ref: (H, P)  [contraction dim on RHS sublane axis -> MXU native],
    # b_ref: (1, P), o_ref: (tm, P)
    acc = jnp.dot(x_ref[...], w_ref[...], preferred_element_type=jnp.float32)
    acc = acc + b_ref[...].astype(jnp.float32)      # f32 bias epilogue, broadcast over rows
    o_ref[...] = acc.astype(o_ref.dtype)


def _sublane_multiple(dtype) -> int:
    # min sublane tile: 8 for 32-bit, 16 for 16-bit, 32 for 8-bit dtypes
    bits = jnp.dtype(dtype).itemsize * 8
    return max(8, 256 // bits)


def prepare_projector_params(weight_torch_layout, bias):
    """One-time param prep (do this at load time, outside the per-call hot path).

    weight_torch_layout: (P, H) as in torch nn.Linear.weight  ->  returns (H, P) weight
    bias: (P,)                                                ->  returns (1, P) bias
    """
    w_hp = jnp.asarray(weight_torch_layout).T          # single transpose at param load
    b2d = jnp.asarray(bias).reshape(1, -1)
    return w_hp, b2d


def paligemma_multimodal_projector(image_features, weight_hp, bias2d, *, tm=512,
                                   core_parallel=False):
    """image_features: (B, S, H); weight_hp: (H, P) [pre-transposed]; bias2d: (1, P)."""
    B, S, H = image_features.shape
    H_w, P = weight_hp.shape
    assert H == H_w, "weight in_features must match image_features hidden size"
    assert bias2d.shape == (1, P)
    M = B * S

    x2d = image_features.reshape(M, H)                 # contiguous reshape, no copy

    # Tile size over M (the only tiled axis). Ragged tails use a masked edge block
    # instead of padding the activations.
    sub = _sublane_multiple(image_features.dtype)
    if M <= tm:
        tm_eff = M                                     # full-dim block: always legal
        grid_m = 1
    else:
        tm_eff = max(sub, (tm // sub) * sub)           # dtype-correct sublane multiple
        grid_m = pl.cdiv(M, tm_eff)                    # last block masked if ragged

    out_dtype = image_features.dtype
    xb = jnp.dtype(image_features.dtype).itemsize
    wb = jnp.dtype(weight_hp.dtype).itemsize
    ob = jnp.dtype(out_dtype).itemsize

    # VMEM footprint: x + out tiles double-buffered, resident weight/bias (Pallas
    # allocates 2 buffers but only DMAs the constant-index slab once). Leave headroom,
    # cap at 64 MiB so the limit is valid on v7x (64 MiB physical per TC).
    vmem_needed = (2 * tm_eff * H * xb          # x tiles (double-buffered)
                   + 2 * H * P * wb             # resident weight slab
                   + 2 * P * wb                 # bias
                   + 2 * tm_eff * P * ob)       # output tiles (double-buffered)
    vmem_limit = int(min(max(vmem_needed + (4 << 20), 32 << 20), 64 << 20))

    cost = pl.CostEstimate(
        flops=2 * M * H * P,
        transcendentals=0,
        bytes_accessed=M * H * xb + H * P * wb + P * wb + M * P * ob,
    )

    m_sem = pltpu.CORE_PARALLEL if core_parallel else "parallel"

    out2d = pl.pallas_call(
        _projector_kernel,
        out_shape=jax.ShapeDtypeStruct((M, P), out_dtype),
        grid=(grid_m,),
        in_specs=[
            pl.BlockSpec((tm_eff, H), lambda i: (i, 0)),   # x streams over M
            pl.BlockSpec((H, P), lambda i: (0, 0)),        # weight: resident, DMA'd once
            pl.BlockSpec((1, P), lambda i: (0, 0)),        # bias: resident
        ],
        out_specs=pl.BlockSpec((tm_eff, P), lambda i: (i, 0)),
        compiler_params=pltpu.CompilerParams(
            dimension_semantics=(m_sem,),
            vmem_limit_bytes=vmem_limit,
        ),
        cost_estimate=cost,
    )(x2d, weight_hp, bias2d)

    return out2d.reshape(B, S, P)


def paligemma_multimodal_projector_from_torch_layout(image_features, weight, bias, **kw):
    """Convenience wrapper taking torch nn.Linear layout weight (P, H) and bias (P,)."""
    w_hp, b2d = prepare_projector_params(weight, bias)
    return paligemma_multimodal_projector(image_features, w_hp, b2d, **kw)


if __name__ == "__main__":
    # Small PaliGemma-like config: vision hidden_size=32, projection_dim=64.
    batch, seq, hidden_size, projection_dim = 2, 8, 32, 64

    key = jax.random.PRNGKey(0)
    k_x, k_w, k_b = jax.random.split(key, 3)

    image_features = jax.random.normal(k_x, (batch, seq, hidden_size), dtype=jnp.float32)
    # Deterministic synthetic nn.Linear(hidden_size, projection_dim) params (torch layout).
    weight = jax.random.normal(k_w, (projection_dim, hidden_size), dtype=jnp.float32) * 0.02
    bias = jax.random.normal(k_b, (projection_dim,), dtype=jnp.float32) * 0.02

    # One-time param prep (transpose to (H, P)), then run the kernel.
    w_hp, b2d = prepare_projector_params(weight, bias)
    out = paligemma_multimodal_projector(image_features, w_hp, b2d)
    jax.block_until_ready(out)

    # Reference check against plain JAX (same semantics as torch nn.Linear).
    ref = image_features @ weight.T + bias
    assert out.shape == (batch, seq, projection_dim)
    assert jnp.allclose(out, ref, atol=1e-5, rtol=1e-5)

    print("KERNEL_OK")
</pallas_src>

<mosaic_0001>
module attributes {stable_mosaic.version = 11 : i64} {
  func.func @_projector_kernel(%arg0: i32, %arg1: memref<16x32xf32, #tpu.memory_space<vmem>>, %arg2: memref<32x64xf32, #tpu.memory_space<vmem>>, %arg3: memref<1x64xf32, #tpu.memory_space<vmem>>, %arg4: memref<16x64xf32, #tpu.memory_space<vmem>>) attributes {dimension_semantics = [#tpu.dimension_semantics<parallel>], iteration_bounds = array<i64: 1>, scalar_prefetch = 0 : i64, scratch_operands = 0 : i64, tpu.core_type = #tpu.core_type<tc>, window_params = [{transform_indices = @transform_0, window_bounds = array<i64: 16, 32>}, {pipeline_mode = #tpu.pipeline_mode<synchronous>, transform_indices = @transform_1, window_bounds = array<i64: 32, 64>}, {pipeline_mode = #tpu.pipeline_mode<synchronous>, transform_indices = @transform_2, window_bounds = array<i64: 1, 64>}, {transform_indices = @transform_3, window_bounds = array<i64: 16, 64>}]} {
    %c0 = arith.constant 0 : index
    %c0_0 = arith.constant 0 : index
    %0 = vector.load %arg1[%c0, %c0_0] : memref<16x32xf32, #tpu.memory_space<vmem>>, vector<16x32xf32>
    %c0_1 = arith.constant 0 : index
    %c0_2 = arith.constant 0 : index
    %1 = vector.load %arg2[%c0_1, %c0_2] : memref<32x64xf32, #tpu.memory_space<vmem>>, vector<32x64xf32>
    %cst = arith.constant dense<0.000000e+00> : vector<16x64xf32>
    %2 = tpu.matmul %0, %1, %cst {dimension_numbers = #tpu.dot_dimension_numbers<[1], [0], [0], [1], [0, 0, 1, 1], [], []>} : vector<16x32xf32>, vector<32x64xf32>, vector<16x64xf32> -> vector<16x64xf32>
    %c0_3 = arith.constant 0 : index
    %c0_4 = arith.constant 0 : index
    %3 = vector.load %arg3[%c0_3, %c0_4] : memref<1x64xf32, #tpu.memory_space<vmem>>, vector<1x64xf32>
    %4 = vector.broadcast %3 : vector<1x64xf32> to vector<16x64xf32>
    %5 = arith.addf %2, %4 : vector<16x64xf32>
    %c0_5 = arith.constant 0 : index
    %c0_6 = arith.constant 0 : index
    %6 = vector.load %arg4[%c0_5, %c0_6] : memref<16x64xf32, #tpu.memory_space<vmem>>, vector<16x64xf32>
    tpu.vector_store %arg4[%c0_5, %c0_6], %5 {strides = array<i32>} : memref<16x64xf32, #tpu.memory_space<vmem>>, vector<16x64xf32>,
    return
  }
  func.func @transform_0(%arg0: i32) -> (i32, i32) {
    %c0_i32 = arith.constant 0 : i32
    %c0_i32_0 = arith.constant 0 : i32
    return %arg0, %c0_i32 : i32, i32
  }
  func.func @transform_1(%arg0: i32) -> (i32, i32) {
    %c0_i32 = arith.constant 0 : i32
    %c0_i32_0 = arith.constant 0 : i32
    %c0_i32_1 = arith.constant 0 : i32
    return %c0_i32, %c0_i32_0 : i32, i32
  }
  func.func @transform_2(%arg0: i32) -> (i32, i32) {
    %c0_i32 = arith.constant 0 : i32
    %c0_i32_0 = arith.constant 0 : i32
    %c0_i32_1 = arith.constant 0 : i32
    return %c0_i32, %c0_i32_0 : i32, i32
  }
  func.func @transform_3(%arg0: i32) -> (i32, i32) {
    %c0_i32 = arith.constant 0 : i32
    %c0_i32_0 = arith.constant 0 : i32
    return %arg0, %c0_i32 : i32, i32
  }
}

</mosaic_0001>

<bundles_post_ra>
// kernel: tpu_custom_call.1
= control target key start
LH: loop header
LB: loop body
LE: loop exit
PB: predicated region body
PF: predicated region fallthrough
CT: control target
= control target key end

     0   :  { %8 = vsyncpa [#allocation3], 0  ;;  %s246_s0 = inlined_call_operand.hbm [shape: f32[16,32], index: 0, kind: input, shape index: {}]   ;;  %s247_s1 = inlined_call_operand.hbm [shape: f32[32,64], index: 1, kind: input, shape index: {}]   ;;  %s248_s2 = inlined_call_operand.vmem [shape: f32[1,64], index: 2, kind: input, shape index: {}]   ;;  %s249_s3 = inlined_call_operand.hbm [shape: f32[16,64], index: 3, kind: output, shape index: {}]  }
   0x1   :  { %9 = vsyncpa [#allocation6], 0 }
   0x2   :  { %10 = vsyncpa [#allocation4], 0  ;;  %s15_s14 = sshll.u32 %s246_s0, 4  ;;  %s200_s15 = smov [#allocation2]   ;;  %s16_s14 = int_to_ptr.hbm [resolvable:$true] %s15_s14 }
   0x3   :  { %s17_s16 = sshll.u32 %s200_s15, 4  ;;  %s28_s19 = sshll.u32 %s247_s1, 4  ;;  %s18_s16 = int_to_ptr.vmem [resolvable:$true] %s17_s16  ;;  %s29_s19 = int_to_ptr.hbm [resolvable:$true] %s28_s19 }
   0x4   :  { %s201_s20 = smov 128   ;;  %s202_s21 = smov 8  }
   0x5   :  { %23 = dma.hbm_to_vmem [thread:$0]  %s16_s14, 256, %s18_s16, [#allocation3], %s201_s20, %s201_s20, %s202_s21  }
   0x6   :  { %s203_s22 = smov [#allocation5]  }
   0x7   :  { %s30_s23 = sshll.u32 %s203_s22, 4  ;;  %s31_s23 = int_to_ptr.vmem [resolvable:$true] %s30_s23 }
   0x8   :  { %36 = dma.hbm_to_vmem [thread:$0]  %s29_s19, 512, %s31_s23, [#allocation6], %s201_s20, %s201_s20, %s202_s21  }
   0x9   :  { %194 = dma.done.wait [#allocation3], 256  }
   0xa   :  { %195 = vsyncadd [#allocation3], 4294967040 }
   0xb   :  { %196 = dma.done.wait [#allocation6], 512  }
   0xc   :  { %197 = vsyncadd [#allocation6], 4294966784  ;;  %v52_v0 = vld [vmem:[#allocation5 + $0x18] sm:$0xff]  ;;  %v51_v1 = vld [vmem:[#allocation5 + $0x10] sm:$0xff]  ;;  %vm57_vm0 = vcmask 261120   ;;  %s204_s24 = smov [#allocation7]  }
   0xd   :  { %76 = vmatpush.msra.mxu0 %v52_v0  ;;  %112 = vmatpush.msra.mxu1 %v52_v0  ;;  %v50_v2 = vld [vmem:[#allocation5 + $0x8] sm:$0xff]  ;;  %v49_v3 = vld [vmem:[#allocation5] sm:$0xff]  ;;  %v47_v4 = vld [vmem:[#allocation2] sm:$0xff]  ;;  %s94_s25 = sshll.u32 %s204_s24, 4  ;;  %s96_s28 = sshll.u32 %s249_s3, 4  ;;  %vm87_vm1 = vcmask 523264   ;;  %s95_s25 = int_to_ptr.vmem [resolvable:$true] %s94_s25  ;;  %s97_s28 = int_to_ptr.hbm [resolvable:$true] %s96_s28 }
   0xe   :  { %v48_v5 = vld [vmem:[#allocation2 + $0x8] sm:$0xff]  ;;  %v121_v6 = vld [vmem:[%s248_s2] ss:$0 sm:$0xff] }
   0xf   :  { %77 = vmatpush.msra.mxu0 %v51_v1  ;;  %113 = vmatpush.msra.mxu1 %v51_v1 }
  0x11   :  { %78 = vmatpush.msra.mxu0 %v50_v2  ;;  %114 = vmatpush.msra.mxu1 %v50_v2 }
  0x13   :  { %79 = vmatpush.msra.mxu0 %v49_v3  ;;  %115 = vmatpush.msra.mxu1 %v49_v3 }
  0x14   :  { %110 = vmatmul.msk.f32.vlgmr.msra.gmra.mxu0 %vm57_vm0, %v47_v4  ;;  %111 = vmatmul.msk.f32.vlgmr.msra.gmra.mxu1 %vm57_vm0, %v48_v5 }
  0x91   :  { %v81_v7 = vpop.f32.mrf.mxu0  ;;  %v84_v8 = vpop.f32.mrf.mxu1 }
  0x92   :  { %v82_v9 = vadd.f32 %v121_v6, %v81_v7  ;;  %v85_v10 = vadd.f32 %v121_v6, %v84_v8 }
  0x94   :  { %88 = vst.msk [vmem:[#allocation7] sm:$0xff] %vm87_vm1, %v82_v9 }
  0x95   :  { %89 = vst.msk [vmem:[#allocation7 + $0x8] sm:$0xff] %vm87_vm1, %v85_v10 }
  0x96   :  { %102 = dma.vmem_to_hbm [thread:$0]  %s95_s25, 256, %s97_s28, [#allocation4], %s201_s20, %s201_s20, %s202_s21  }
  0x97   :  { %198 = dma.done.wait [#allocation4], 256  }
  0x98   :  { %199 = vsyncadd [#allocation4], 4294967040 }
  0x99   :  { %107 = vsyncpa [#allocation3], 1 }
  0x9a   :  { %108 = vsyncpa [#allocation6], 1 }
  0x9b   :  { %109 = vsyncpa [#allocation4], 1 }

</bundles_post_ra>
